<compile_context>
chip_gen: v7x
topology: tpu7x:2x2x1
jax: 0.10.0
libtpu: 0.0.40
codegen_flags: <defaults>
</compile_context>

<pallas_src>
import math
from functools import partial

import jax
import jax.numpy as jnp
from jax.experimental import pallas as pl
from jax.experimental.pallas import tpu as pltpu

_PI_APPROX = 3.14159265   # the constant used by the PyTorch module
_M = 4                    # margin: mlambda[4](c) = 8c^4 - 8c^2 + 1
# k = floor(m * acos(c) / pi); acos is monotone decreasing on [-1, 1], so
#   k >= j  <=>  c <= cos(j*pi/m).  Count thresholds instead of evaluating acos on-chip.
_K_THRESHOLDS = tuple(math.cos(j * _PI_APPROX / _M) for j in range(1, _M + 1))


def _round_up(n, m):
    return ((n + m - 1) // m) * m


def _angle_linear_kernel(scale_ref, label_ref, xn_ref, xnorm_ref, wn_ref, out_ref):
    j = pl.program_id(1)
    tb, tc = out_ref.shape

    # cos_theta = normalize(x) @ normalize(W)^T -- contract last dims directly (no .T)
    cos_theta = jax.lax.dot_general(
        xn_ref[...], wn_ref[...],
        dimension_numbers=(((1,), (1,)), ((), ())),
        preferred_element_type=jnp.float32)                    # (tb, tc) f32 accumulator
    cos_theta = jnp.clip(cos_theta, -1.0, 1.0)

    # one-hot: j-invariant local iota vs. the label shifted into this class tile.
    lbl_local = label_ref[...] - j * tc                        # (tb, 1) int32
    col = jax.lax.broadcasted_iota(jnp.int32, (tb, tc), 1)     # 0..tc-1, same every step
    one_hot = (col == lbl_local).astype(jnp.float32)

    # Label-column cosine via masked cross-lane reduce (XLU slot) -> (tb, 1).
    # If the label is not in this class tile, one_hot == 0 everywhere and the correction
    # below is multiplied away, so the garbage lbl_cos = 0 value is harmless.
    lbl_cos = jnp.sum(one_hot * cos_theta, axis=-1, keepdims=True)

    # ---- margin math restricted to the (tb, 1) label column ----
    c2 = lbl_cos * lbl_cos
    cos_m = 8.0 * c2 * c2 - 8.0 * c2 + 1.0                     # cos(4*theta), Chebyshev
    k = jnp.zeros_like(lbl_cos)                                # k = floor(4*acos(c)/pi)
    sign = jnp.ones_like(lbl_cos)                              # (-1)^k via chained where
    for thr in _K_THRESHOLDS:
        hit = lbl_cos <= jnp.float32(thr)
        k = k + hit.astype(jnp.float32)
        sign = jnp.where(hit, -sign, sign)
    phi = sign * cos_m - 2.0 * k

    scale = scale_ref[0, 0]                                    # 1 / (1 + lamb), from SMEM
    xnorm = xnorm_ref[...]                                     # (tb, 1) = ||x|| per row
    corr = (phi - lbl_cos) * scale * xnorm                     # (tb, 1)

    # Dense epilogue is just: scale by ||x|| and add the one-hot correction.
    out_ref[...] = (cos_theta * xnorm + one_hot * corr).astype(out_ref.dtype)


@partial(jax.jit, static_argnames=("tile_b", "tile_c", "matmul_dtype", "out_dtype"))
def _angle_linear_impl(x, weight, label, scale_arr, *, tile_b, tile_c,
                       matmul_dtype, out_dtype):
    B, D = x.shape
    C, D_w = weight.shape
    assert D == D_w

    # One cheap fused wrapper pass: L2-normalize both operands, cast MXU operands to bf16.
    w32 = weight.astype(jnp.float32)
    wn = (w32 * jax.lax.rsqrt(
        jnp.maximum(jnp.sum(w32 * w32, axis=1, keepdims=True), 1e-24))).astype(matmul_dtype)

    x32 = x.astype(jnp.float32)
    sumsq = jnp.sum(x32 * x32, axis=1, keepdims=True)
    xnorm = jnp.sqrt(sumsq)                                    # torch.norm(input, 2, 1)
    xn = (x32 * jax.lax.rsqrt(jnp.maximum(sumsq, 1e-24))).astype(matmul_dtype)

    # --- tile sizing: sublane dims multiples of 8, lane (class) dims multiples of 128 ---
    tb = min(tile_b, _round_up(B, 8))
    tc = min(tile_c, _round_up(C, 128))
    B_pad = _round_up(B, tb)
    C_pad = _round_up(C, tc)

    if B_pad != B:
        xn = jnp.pad(xn, ((0, B_pad - B), (0, 0)))
        xnorm = jnp.pad(xnorm, ((0, B_pad - B), (0, 0)))
    if C_pad != C:
        wn = jnp.pad(wn, ((0, C_pad - C), (0, 0)))
    label_p = label.reshape(-1).astype(jnp.int32)
    if B_pad != B:
        label_p = jnp.pad(label_p, (0, B_pad - B), constant_values=-1)
    label_p = label_p.reshape(B_pad, 1)

    grid = (B_pad // tb, C_pad // tc)

    # Rough VMEM budget (double-buffered blocks + headroom), capped at 48 MiB for v7x.
    mm_sz = jnp.dtype(matmul_dtype).itemsize
    out_sz = jnp.dtype(out_dtype).itemsize
    est = 2 * (tb * D * mm_sz + tc * D * mm_sz + tb * tc * out_sz + 2 * tb * 4)
    vmem_limit = int(min(max(2 * est, 32 * 1024 * 1024), 48 * 1024 * 1024))

    out_p = pl.pallas_call(
        _angle_linear_kernel,
        out_shape=jax.ShapeDtypeStruct((B_pad, C_pad), out_dtype),
        grid_spec=pltpu.PrefetchScalarGridSpec(
            num_scalar_prefetch=0,
            grid=grid,
            in_specs=[
                pl.BlockSpec(memory_space=pltpu.MemorySpace.SMEM),  # scale = 1/(1+lamb)
                pl.BlockSpec((tb, 1), lambda i, j: (i, 0)),         # label per batch tile
                pl.BlockSpec((tb, D), lambda i, j: (i, 0)),         # normalized x (bf16)
                pl.BlockSpec((tb, 1), lambda i, j: (i, 0)),         # ||x|| per row (f32)
                pl.BlockSpec((tc, D), lambda i, j: (j, 0)),         # normalized W (bf16)
            ],
            out_specs=pl.BlockSpec((tb, tc), lambda i, j: (i, j)),
        ),
        compiler_params=pltpu.CompilerParams(
            # No grid axis carries state anymore -> both axes are independent and
            # megacore-shardable.
            dimension_semantics=("parallel", "parallel"),
            vmem_limit_bytes=vmem_limit,
        ),
    )(scale_arr, label_p, xn, xnorm, wn)

    return out_p[:B, :C]


def angle_linear(x, weight, label, iter_count=1, *,
                 tile_b=512, tile_c=1024,
                 matmul_dtype=jnp.bfloat16, out_dtype=jnp.float32):
    """Pallas TPU implementation of AngleLinear.forward(input, label), m = 4.

    The PyTorch module's `self.iter` counter is handled host-side via `iter_count`;
    lamb only enters the kernel as the SMEM scalar 1/(1+lamb), so it never recompiles.
    """
    lamb = max(5.0, 1000.0 * (1.0 + 0.12 * iter_count) ** (-1.0))
    scale_arr = jnp.full((1, 1), 1.0 / (1.0 + lamb), dtype=jnp.float32)
    return _angle_linear_impl(x, weight, label, scale_arr,
                              tile_b=tile_b, tile_c=tile_c,
                              matmul_dtype=matmul_dtype, out_dtype=out_dtype)


def angle_linear_reference(x, weight, label, iter_count=1, matmul_dtype=jnp.bfloat16):
    """Pure-JAX reference for the PyTorch forward (real acos; same matmul precision as
    the kernel so the comparison isolates kernel plumbing, not bf16 rounding)."""
    lamb = max(5.0, 1000.0 * (1.0 + 0.12 * iter_count) ** (-1.0))
    x32 = x.astype(jnp.float32)
    w32 = weight.astype(jnp.float32)
    x_norm = jnp.sqrt(jnp.sum(x32 * x32, axis=1, keepdims=True))
    xn = x32 / jnp.maximum(x_norm, 1e-12)
    wn = w32 / jnp.maximum(jnp.sqrt(jnp.sum(w32 * w32, axis=1, keepdims=True)), 1e-12)
    cos_theta = jax.lax.dot_general(
        xn.astype(matmul_dtype), wn.astype(matmul_dtype),
        dimension_numbers=(((1,), (1,)), ((), ())),
        preferred_element_type=jnp.float32)
    cos_theta = jnp.clip(cos_theta, -1.0, 1.0)
    cos_m_theta = 8.0 * cos_theta ** 4 - 8.0 * cos_theta ** 2 + 1.0
    theta = jnp.arccos(cos_theta)
    k = jnp.floor(_M * theta / _PI_APPROX)
    sign = 1.0 - 2.0 * (k % 2.0)
    phi_theta = sign * cos_m_theta - 2.0 * k
    one_hot = jax.nn.one_hot(label, cos_theta.shape[1], dtype=jnp.float32)
    out = one_hot * (phi_theta - cos_theta) / (1.0 + lamb) + cos_theta
    return out * x_norm


if __name__ == "__main__":
    # Small shapes consistent with the module: batch=32, in_features=32, out_features=300.
    B, D, C = 32, 32, 300
    key = jax.random.PRNGKey(0)
    kx, kw, kl = jax.random.split(key, 3)

    x = jax.random.normal(kx, (B, D), dtype=jnp.float32)
    # xavier_uniform_ for weight of shape (out_features, in_features)
    bound = math.sqrt(6.0 / (D + C))
    weight = jax.random.uniform(kw, (C, D), dtype=jnp.float32, minval=-bound, maxval=bound)
    label = jax.random.randint(kl, (B,), 0, C, dtype=jnp.int32)

    ref = angle_linear_reference(x, weight, label, iter_count=1)

    # 1) Default (large) tiles: single-step grid at these small shapes.
    out = jax.block_until_ready(angle_linear(x, weight, label, iter_count=1))
    assert out.shape == (B, C)
    assert jnp.allclose(out, ref, atol=5e-3, rtol=5e-3), "kernel/reference mismatch (default tiles)"

    # 2) Small tiles: exercises a real (2, 3) grid with a padded last class tile.
    out_small = jax.block_until_ready(
        angle_linear(x, weight, label, iter_count=1, tile_b=16, tile_c=128))
    assert jnp.allclose(out_small, ref, atol=5e-3, rtol=5e-3), "kernel/reference mismatch (small tiles)"

    print("KERNEL_OK")
</pallas_src>

<mosaic_0001>
module attributes {stable_mosaic.version = 11 : i64} {
  func.func @_angle_linear_kernel(%arg0: i32, %arg1: i32, %arg2: memref<1x1xf32, #tpu.memory_space<smem>>, %arg3: memref<32x1xi32, #tpu.memory_space<vmem>>, %arg4: memref<32x32xbf16, #tpu.memory_space<vmem>>, %arg5: memref<32x1xf32, #tpu.memory_space<vmem>>, %arg6: memref<384x32xbf16, #tpu.memory_space<vmem>>, %arg7: memref<32x384xf32, #tpu.memory_space<vmem>>) attributes {dimension_semantics = [#tpu.dimension_semantics<parallel>, #tpu.dimension_semantics<parallel>], iteration_bounds = array<i64: 1, 1>, scalar_prefetch = 0 : i64, scratch_operands = 0 : i64, tpu.core_type = #tpu.core_type<tc>, window_params = [{transform_indices = @transform_0, window_bounds = array<i64: 1, 1>}, {transform_indices = @transform_1, window_bounds = array<i64: 32, 1>}, {transform_indices = @transform_2, window_bounds = array<i64: 32, 32>}, {transform_indices = @transform_3, window_bounds = array<i64: 32, 1>}, {transform_indices = @transform_4, window_bounds = array<i64: 384, 32>}, {transform_indices = @transform_5, window_bounds = array<i64: 32, 384>}]} {
    %c0 = arith.constant 0 : index
    %c0_0 = arith.constant 0 : index
    %0 = vector.load %arg4[%c0, %c0_0] : memref<32x32xbf16, #tpu.memory_space<vmem>>, vector<32x32xbf16>
    %c0_1 = arith.constant 0 : index
    %c0_2 = arith.constant 0 : index
    %1 = vector.load %arg6[%c0_1, %c0_2] : memref<384x32xbf16, #tpu.memory_space<vmem>>, vector<384x32xbf16>
    %cst = arith.constant dense<0.000000e+00> : vector<32x384xf32>
    %2 = tpu.matmul %0, %1, %cst {dimension_numbers = #tpu.dot_dimension_numbers<[1], [1], [0], [0], [0, 0, 1, 0], [], []>} : vector<32x32xbf16>, vector<384x32xbf16>, vector<32x384xf32> -> vector<32x384xf32>
    %cst_3 = arith.constant -1.000000e+00 : f32
    %cst_4 = arith.constant 1.000000e+00 : f32
    %3 = vector.broadcast %cst_3 : f32 to vector<32x384xf32>
    %4 = arith.maximumf %3, %2 : vector<32x384xf32>
    %5 = vector.broadcast %cst_4 : f32 to vector<32x384xf32>
    %6 = arith.minimumf %5, %4 : vector<32x384xf32>
    %c0_5 = arith.constant 0 : index
    %c0_6 = arith.constant 0 : index
    %7 = vector.load %arg3[%c0_5, %c0_6] : memref<32x1xi32, #tpu.memory_space<vmem>>, vector<32x1xi32>
    %c384_i32 = arith.constant 384 : i32
    %8 = arith.muli %arg1, %c384_i32 : i32
    %9 = vector.broadcast %8 : i32 to vector<32x1xi32>
    %10 = arith.subi %7, %9 : vector<32x1xi32>
    %11 = tpu.iota {dimensions = array<i32: 1>} : vector<32x384xi32>
    %12 = vector.broadcast %10 : vector<32x1xi32> to vector<32x384xi32>
    %13 = arith.cmpi eq, %11, %12 : vector<32x384xi32>
    %14 = arith.extui %13 : vector<32x384xi1> to vector<32x384xi32>
    %15 = arith.sitofp %14 : vector<32x384xi32> to vector<32x384xf32>
    %16 = arith.mulf %15, %6 : vector<32x384xf32>
    %cst_7 = arith.constant dense<0.000000e+00> : vector<32xf32>
    %17 = vector.multi_reduction <add>, %16, %cst_7 [1] : vector<32x384xf32> to vector<32xf32>
    %18 = vector.shape_cast %17 : vector<32xf32> to vector<32x1xf32>
    %19 = arith.mulf %18, %18 : vector<32x1xf32>
    %cst_8 = arith.constant 8.000000e+00 : f32
    %20 = vector.broadcast %cst_8 : f32 to vector<32x1xf32>
    %21 = arith.mulf %20, %19 : vector<32x1xf32>
    %22 = arith.mulf %21, %19 : vector<32x1xf32>
    %cst_9 = arith.constant 8.000000e+00 : f32
    %23 = vector.broadcast %cst_9 : f32 to vector<32x1xf32>
    %24 = arith.mulf %23, %19 : vector<32x1xf32>
    %25 = arith.subf %22, %24 : vector<32x1xf32>
    %cst_10 = arith.constant 1.000000e+00 : f32
    %26 = vector.broadcast %cst_10 : f32 to vector<32x1xf32>
    %27 = arith.addf %25, %26 : vector<32x1xf32>
    %cst_11 = arith.constant 0.000000e+00 : f32
    %28 = vector.broadcast %cst_11 : f32 to vector<32x1xf32>
    %cst_12 = arith.constant 1.000000e+00 : f32
    %29 = vector.broadcast %cst_12 : f32 to vector<32x1xf32>
    %cst_13 = arith.constant 0.707106769 : f32
    %30 = vector.broadcast %cst_13 : f32 to vector<32x1xf32>
    %31 = arith.cmpf ole, %18, %30 : vector<32x1xf32>
    %32 = arith.extui %31 : vector<32x1xi1> to vector<32x1xi32>
    %33 = arith.sitofp %32 : vector<32x1xi32> to vector<32x1xf32>
    %34 = arith.addf %28, %33 : vector<32x1xf32>
    %cst_14 = arith.constant 0.000000e+00 : f32
    %35 = vector.broadcast %cst_14 : f32 to vector<32x1xf32>
    %36 = arith.subf %35, %29 : vector<32x1xf32>
    %37 = arith.select %31, %36, %29 : vector<32x1xi1>, vector<32x1xf32>
    %cst_15 = arith.constant 1.79489656E-9 : f32
    %38 = vector.broadcast %cst_15 : f32 to vector<32x1xf32>
    %39 = arith.cmpf ole, %18, %38 : vector<32x1xf32>
    %40 = arith.extui %39 : vector<32x1xi1> to vector<32x1xi32>
    %41 = arith.sitofp %40 : vector<32x1xi32> to vector<32x1xf32>
    %42 = arith.addf %34, %41 : vector<32x1xf32>
    %cst_16 = arith.constant 0.000000e+00 : f32
    %43 = vector.broadcast %cst_16 : f32 to vector<32x1xf32>
    %44 = arith.subf %43, %37 : vector<32x1xf32>
    %45 = arith.select %39, %44, %37 : vector<32x1xi1>, vector<32x1xf32>
    %cst_17 = arith.constant -0.707106769 : f32
    %46 = vector.broadcast %cst_17 : f32 to vector<32x1xf32>
    %47 = arith.cmpf ole, %18, %46 : vector<32x1xf32>
    %48 = arith.extui %47 : vector<32x1xi1> to vector<32x1xi32>
    %49 = arith.sitofp %48 : vector<32x1xi32> to vector<32x1xf32>
    %50 = arith.addf %42, %49 : vector<32x1xf32>
    %cst_18 = arith.constant 0.000000e+00 : f32
    %51 = vector.broadcast %cst_18 : f32 to vector<32x1xf32>
    %52 = arith.subf %51, %45 : vector<32x1xf32>
    %53 = arith.select %47, %52, %45 : vector<32x1xi1>, vector<32x1xf32>
    %cst_19 = arith.constant -1.000000e+00 : f32
    %54 = vector.broadcast %cst_19 : f32 to vector<32x1xf32>
    %55 = arith.cmpf ole, %18, %54 : vector<32x1xf32>
    %56 = arith.extui %55 : vector<32x1xi1> to vector<32x1xi32>
    %57 = arith.sitofp %56 : vector<32x1xi32> to vector<32x1xf32>
    %58 = arith.addf %50, %57 : vector<32x1xf32>
    %cst_20 = arith.constant 0.000000e+00 : f32
    %59 = vector.broadcast %cst_20 : f32 to vector<32x1xf32>
    %60 = arith.subf %59, %53 : vector<32x1xf32>
    %61 = arith.select %55, %60, %53 : vector<32x1xi1>, vector<32x1xf32>
    %62 = arith.mulf %61, %27 : vector<32x1xf32>
    %cst_21 = arith.constant 2.000000e+00 : f32
    %63 = vector.broadcast %cst_21 : f32 to vector<32x1xf32>
    %64 = arith.mulf %63, %58 : vector<32x1xf32>
    %65 = arith.subf %62, %64 : vector<32x1xf32>
    %c0_22 = arith.constant 0 : index
    %c0_23 = arith.constant 0 : index
    %66 = memref.load %arg2[%c0_22, %c0_23] : memref<1x1xf32, #tpu.memory_space<smem>>
    %c0_24 = arith.constant 0 : index
    %c0_25 = arith.constant 0 : index
    %67 = vector.load %arg5[%c0_24, %c0_25] : memref<32x1xf32, #tpu.memory_space<vmem>>, vector<32x1xf32>
    %68 = arith.subf %65, %18 : vector<32x1xf32>
    %69 = vector.broadcast %66 : f32 to vector<32x1xf32>
    %70 = arith.mulf %68, %69 : vector<32x1xf32>
    %71 = arith.mulf %70, %67 : vector<32x1xf32>
    %72 = vector.broadcast %67 : vector<32x1xf32> to vector<32x384xf32>
    %73 = arith.mulf %6, %72 : vector<32x384xf32>
    %74 = vector.broadcast %71 : vector<32x1xf32> to vector<32x384xf32>
    %75 = arith.mulf %15, %74 : vector<32x384xf32>
    %76 = arith.addf %73, %75 : vector<32x384xf32>
    %c0_26 = arith.constant 0 : index
    %c0_27 = arith.constant 0 : index
    %77 = vector.load %arg7[%c0_26, %c0_27] : memref<32x384xf32, #tpu.memory_space<vmem>>, vector<32x384xf32>
    tpu.vector_store %arg7[%c0_26, %c0_27], %76 {strides = array<i32>} : memref<32x384xf32, #tpu.memory_space<vmem>>, vector<32x384xf32>,
    return
  }
  func.func @transform_0(%arg0: i32, %arg1: i32) -> (i32, i32) {
    %c0_i32 = arith.constant 0 : i32
    %c0_i32_0 = arith.constant 0 : i32
    %c0_i32_1 = arith.constant 0 : i32
    return %c0_i32, %c0_i32_0 : i32, i32
  }
  func.func @transform_1(%arg0: i32, %arg1: i32) -> (i32, i32) {
    %c0_i32 = arith.constant 0 : i32
    %c0_i32_0 = arith.constant 0 : i32
    return %arg0, %c0_i32 : i32, i32
  }
  func.func @transform_2(%arg0: i32, %arg1: i32) -> (i32, i32) {
    %c0_i32 = arith.constant 0 : i32
    %c0_i32_0 = arith.constant 0 : i32
    return %arg0, %c0_i32 : i32, i32
  }
  func.func @transform_3(%arg0: i32, %arg1: i32) -> (i32, i32) {
    %c0_i32 = arith.constant 0 : i32
    %c0_i32_0 = arith.constant 0 : i32
    return %arg0, %c0_i32 : i32, i32
  }
  func.func @transform_4(%arg0: i32, %arg1: i32) -> (i32, i32) {
    %c0_i32 = arith.constant 0 : i32
    %c0_i32_0 = arith.constant 0 : i32
    return %arg1, %c0_i32 : i32, i32
  }
  func.func @transform_5(%arg0: i32, %arg1: i32) -> (i32, i32) {
    %c0_i32 = arith.constant 0 : i32
    return %arg0, %arg1 : i32, i32
  }
}

</mosaic_0001>

<bundles_post_ra>
// kernel: _angle_linear_impl.1
= control target key start
LH: loop header
LB: loop body
LE: loop exit
PB: predicated region body
PF: predicated region fallthrough
CT: control target
= control target key end

     0   :  { %vm205_vm0 = vcmask 261120   ;;  %v940_v3 = vmov 0   ;;  %s1409_s0 = inlined_call_operand.<no memory space> [shape: f32[1,1], index: 0, kind: input, shape index: {}]   ;;  %s1410_s1 = inlined_call_operand.vmem [shape: s32[32,1], index: 1, kind: input, shape index: {}]   ;;  %s1411_s2 = inlined_call_operand.vmem [shape: bf16[32,32], index: 2, kind: input, shape index: {}]   ;;  %s1412_s3 = inlined_call_operand.vmem [shape: f32[32,1], index: 3, kind: input, shape index: {}]   ;;  %s1413_s4 = inlined_call_operand.vmem [shape: bf16[384,32], index: 4, kind: input, shape index: {}]   ;;  %s1414_s5 = inlined_call_operand.hbm [shape: f32[32,384], index: 5, kind: output, shape index: {}]  }
   0x1   :  { %v890_v0 = vld [vmem:[%s1413_s4 + $0x40] sm:$0xff]   ;;  %888 = vset.pattern.permute.xlu0 %v940_v3  ;;  %v893_v5 = vld [vmem:[%s1413_s4 + $0x48] sm:$0xff]   ;;  %889 = vset.pattern.permute.xlu1 %v940_v3  ;;  %v896_v10 = vld [vmem:[%s1413_s4 + $0x50] sm:$0xff]  }
   0x2   :  { %v891_v1 = vld [vmem:[%s1413_s4] sm:$0xff]   ;;  %866 = vmatprep.subr.msk.bf16.mxu0 %vm205_vm0, %v890_v0  ;;  %v894_v7 = vld [vmem:[%s1413_s4 + $0x8] sm:$0xff]   ;;  %v898_v12 = vld [vmem:[%s1413_s4 + $0x90] sm:$0xff]  }
   0x3   :  { %v892_v2 = vld [vmem:[%s1413_s4 + $0x80] sm:$0xff]   ;;  %v213_v4 = vsel %vm205_vm0, %v891_v1, 0  ;;  %v895_v8 = vld [vmem:[%s1413_s4 + $0x88] sm:$0xff]   ;;  %v216_v9 = vsel %vm205_vm0, %v894_v7, 0  ;;  %v897_v13 = vld [vmem:[%s1413_s4 + $0x10] sm:$0xff]   ;;  %v267_v16 = vsel %vm205_vm0, %v898_v12, 0 }
   0x4   :  { %817 = vmatpush3.bf16.xpose.msra.mxu0 %v213_v4  ;;  %874 = vmatprep.subr.msk.bf16.mxu1 %vm205_vm0, %v892_v2  ;;  %v261_v6 = vsel %vm205_vm0, %v892_v2, 0  ;;  %v264_v11 = vsel %vm205_vm0, %v895_v8, 0  ;;  %v219_v14 = vsel %vm205_vm0, %v897_v13, 0  ;;  %v899_v15 = vld [vmem:[%s1413_s4 + $0x58] sm:$0xff]   ;;  %v914_v19 = vld [vmem:[%s1411_s2] sm:$0xff]   ;;  %v412_v25 = vld [vmem:[%s1410_s1 + $0x10] sm:$0xff] }
   0x5   :  { %847 = vmatpush3.bf16.xpose.msra.mxu1 %v261_v6  ;;  %867 = vmatprep.subr.msk.bf16.mxu0 %vm205_vm0, %v893_v5  ;;  %v901_v17 = vld [vmem:[%s1413_s4 + $0x98] sm:$0xff]   ;;  %v902_v21 = vld [vmem:[%s1413_s4 + $0x60] sm:$0xff]  }
   0x6   :  { %875 = vmatprep.subr.msk.bf16.mxu1 %vm205_vm0, %v895_v8  ;;  %v900_v18 = vld [vmem:[%s1413_s4 + $0x18] sm:$0xff]   ;;  %v270_v22 = vsel %vm205_vm0, %v901_v17, 0  ;;  %v904_v23 = vld [vmem:[%s1413_s4 + $0xa0] sm:$0xff]   ;;  %832 = vmatprep.mubr.msk.bf16.mxu0 %vm205_vm0, %v914_v19 }
   0x7   :  { %v222_v20 = vsel %vm205_vm0, %v900_v18, 0  ;;  %862 = vmatprep.mubr.msk.bf16.mxu1 %vm205_vm0, %v914_v19  ;;  %v410_v24 = vld [vmem:[%s1410_s1] sm:$0xff]  ;;  %431 = vperm.xlu1 %889, %v412_v25  }
   0x8   :  { %425 = vperm.xlu0 %888, %v410_v24  }
   0xc   :  { %819 = vmatpush3.bf16.xpose.msra.mxu0 %v216_v9 }
   0xd   :  { %849 = vmatpush3.bf16.xpose.msra.mxu1 %v264_v11  ;;  %868 = vmatprep.subr.msk.bf16.mxu0 %vm205_vm0, %v896_v10 }
   0xe   :  { %876 = vmatprep.subr.msk.bf16.mxu1 %vm205_vm0, %v898_v12 }
  0x14   :  { %821 = vmatpush3.bf16.xpose.msra.mxu0 %v219_v14 }
  0x15   :  { %851 = vmatpush3.bf16.xpose.msra.mxu1 %v267_v16  ;;  %869 = vmatprep.subr.msk.bf16.mxu0 %vm205_vm0, %v899_v15 }
  0x16   :  { %877 = vmatprep.subr.msk.bf16.mxu1 %vm205_vm0, %v901_v17 }
  0x17   :  { %11 = vsyncpa [#allocation4], 0  ;;  %v411_v26 = vld [vmem:[%s1410_s1 + $0x8] sm:$0xff]  ;;  %v413_v27 = vld [vmem:[%s1410_s1 + $0x18] sm:$0xff]  ;;  %v273_v31 = vsel %vm205_vm0, %v904_v23, 0  ;;  %v420_v47 = vlaneseq  ;;  %v941_v54 = vmov 0.0  }
  0x18   :  { %v903_v28 = vld [vmem:[%s1413_s4 + $0x20] sm:$0xff]   ;;  %428 = vperm.xlu0 %888, %v411_v26   ;;  %434 = vperm.xlu1 %889, %v413_v27   ;;  %v905_v30 = vld [vmem:[%s1413_s4 + $0x68] sm:$0xff]   ;;  %v908_v35 = vld [vmem:[%s1413_s4 + $0x70] sm:$0xff]  }
  0x19   :  { %v225_v29 = vsel %vm205_vm0, %v903_v28, 0  ;;  %v907_v32 = vld [vmem:[%s1413_s4 + $0xa8] sm:$0xff]   ;;  %v910_v37 = vld [vmem:[%s1413_s4 + $0xb0] sm:$0xff]   ;;  %v911_v40 = vld [vmem:[%s1413_s4 + $0x78] sm:$0xff]   ;;  %v421_v48 = vand.u32 127, %v420_v47 }
  0x1a   :  { %v906_v33 = vld [vmem:[%s1413_s4 + $0x28] sm:$0xff]   ;;  %v276_v36 = vsel %vm205_vm0, %v907_v32, 0  ;;  %v909_v38 = vld [vmem:[%s1413_s4 + $0x30] sm:$0xff]   ;;  %v279_v41 = vsel %vm205_vm0, %v910_v37, 0  ;;  %v913_v42 = vld [vmem:[%s1413_s4 + $0xb8] sm:$0xff]  }
  0x1b   :  { %v228_v34 = vsel %vm205_vm0, %v906_v33, 0  ;;  %v231_v39 = vsel %vm205_vm0, %v909_v38, 0  ;;  %v912_v43 = vld [vmem:[%s1413_s4 + $0x38] sm:$0xff]   ;;  %v282_v45 = vsel %vm205_vm0, %v913_v42, 0  ;;  %v915_v46 = vld [vmem:[%s1411_s2 + $0x8] sm:$0xff]   ;;  %v1104_v50 = vadd.s32 128, %v421_v48 }
  0x1c   :  { %823 = vmatpush3.bf16.xpose.msra.mxu0 %v222_v20  ;;  %v234_v44 = vsel %vm205_vm0, %v912_v43, 0  ;;  %v1106_v51 = vadd.s32 256, %v421_v48 }
  0x1d   :  { %853 = vmatpush3.bf16.xpose.msra.mxu1 %v270_v22  ;;  %870 = vmatprep.subr.msk.bf16.mxu0 %vm205_vm0, %v902_v21 }
  0x1e   :  { %878 = vmatprep.subr.msk.bf16.mxu1 %vm205_vm0, %v904_v23 }
  0x24   :  { %825 = vmatpush3.bf16.xpose.msra.mxu0 %v225_v29 }
  0x25   :  { %855 = vmatpush3.bf16.xpose.msra.mxu1 %v273_v31  ;;  %871 = vmatprep.subr.msk.bf16.mxu0 %vm205_vm0, %v905_v30 }
  0x26   :  { %879 = vmatprep.subr.msk.bf16.mxu1 %vm205_vm0, %v907_v32 }
  0x2c   :  { %827 = vmatpush3.bf16.xpose.msra.mxu0 %v228_v34 }
  0x2d   :  { %857 = vmatpush3.bf16.xpose.msra.mxu1 %v276_v36  ;;  %872 = vmatprep.subr.msk.bf16.mxu0 %vm205_vm0, %v908_v35 }
  0x2e   :  { %880 = vmatprep.subr.msk.bf16.mxu1 %vm205_vm0, %v910_v37 }
  0x34   :  { %829 = vmatpush3.bf16.xpose.msra.mxu0 %v231_v39 }
  0x35   :  { %859 = vmatpush3.bf16.xpose.msra.mxu1 %v279_v41  ;;  %873 = vmatprep.subr.msk.bf16.mxu0 %vm205_vm0, %v911_v40 }
  0x36   :  { %881 = vmatprep.subr.msk.bf16.mxu1 %vm205_vm0, %v913_v42 }
  0x3c   :  { %831 = vmatpush3.bf16.xpose.msra.mxu0 %v234_v44 }
  0x3d   :  { %861 = vmatpush3.bf16.xpose.msra.mxu1 %v282_v45 }
  0x43   :  { %833 = vmatmul.mubr.msk.bf16.vlgmr.msra.gmra.mrb[0].mxu0 %vm205_vm0, %v914_v19 }
  0x44   :  { %863 = vmatmul.mubr.msk.bf16.vlgmr.msra.gmra.mrb[0].mxu1 %vm205_vm0, %v915_v46  ;;  %834 = vmatprep.mubr.msk.bf16.mxu0 %vm205_vm0, %v915_v46 }
  0x4b   :  { %835 = vmatmul.mubr.msk.bf16.gmra.mrb[4].mxu0 %vm205_vm0, %v915_v46 }
  0x86   :  { %v432_v56 = vpop.permute.xlu1 %431 }
  0x87   :  { %v426_v49 = vpop.permute.xlu0 %425  ;;  %vm442_vm7 = vcmp.eq.s32.totalorder %v421_v48, %v432_v56  ;;  %vm443_vm8 = vcmp.eq.s32.totalorder %v1104_v50, %v432_v56  ;;  %vm444_vm10 = vcmp.eq.s32.totalorder %v1106_v51, %v432_v56 }
  0x88   :  { %vm436_vm1 = vcmp.eq.s32.totalorder %v421_v48, %v426_v49  ;;  %vm437_vm2 = vcmp.eq.s32.totalorder %v1104_v50, %v426_v49  ;;  %vm438_vm3 = vcmp.eq.s32.totalorder %v1106_v51, %v426_v49  ;;  %v1179_v20 = vsel %vm442_vm7, 1.0, %v941_v54  ;;  %v1239_v49 = vld [vmem:[%s1412_s3 + $0x10] sm:$0xff] }
  0x89   :  { %v1113_v55 = vsel %vm436_vm1, 1.0, %v941_v54  ;;  %v1120_v59 = vsel %vm437_vm2, 1.0, %v941_v54  ;;  %v1136_v1 = vsel %vm438_vm3, 1.0, %v941_v54  ;;  %v1186_v25 = vsel %vm443_vm8, 1.0, %v941_v54 }
  0x8a   :  { %v1196_v31 = vsel %vm444_vm10, 1.0, %v941_v54 }
  0x97   :  { %v429_v52 = vpop.permute.xlu0 %428  ;;  %v435_v16 = vpop.permute.xlu1 %434 }
  0x98   :  { %vm439_vm4 = vcmp.eq.s32.totalorder %v421_v48, %v429_v52  ;;  %vm440_vm5 = vcmp.eq.s32.totalorder %v1104_v50, %v429_v52  ;;  %vm441_vm6 = vcmp.eq.s32.totalorder %v1106_v51, %v429_v52  ;;  %vm445_vm9 = vcmp.eq.s32.totalorder %v421_v48, %v435_v16  ;;  %v1233_v48 = vld [vmem:[%s1412_s3] sm:$0xff] }
  0x99   :  { %v1129_v63 = vsel %vm439_vm4, 1.0, %v941_v54  ;;  %v1145_v5 = vsel %vm440_vm5, 1.0, %v941_v54  ;;  %v1159_v11 = vsel %vm441_vm6, 1.0, %v941_v54  ;;  %vm446_vm11 = vcmp.eq.s32.totalorder %v1104_v50, %v435_v16  ;;  %v1245_v50 = vld [vmem:[%s1412_s3 + $0x18] sm:$0xff] }
  0x9a   :  { %v1193_v29 = vsel %vm445_vm9, 1.0, %v941_v54  ;;  %vm447_vm12 = vcmp.eq.s32.totalorder %v1106_v51, %v435_v16  ;;  %v1215_v38 = vsel %vm446_vm11, 1.0, %v941_v54  ;;  %v1251_v51 = vld [vmem:[%s1412_s3 + $0x8] sm:$0xff] }
  0x9b   :  { %1432 = vst [vmem:[#allocation7_spill] sm:$0xff] %v1193_v29  ;;  %1433 = vst [vmem:[#allocation8_spill] sm:$0xff] %v1215_v38  ;;  %v1225_v43 = vsel %vm447_vm12, 1.0, %v941_v54 }
  0x9c   :  { %1434 = vst [vmem:[#allocation9_spill] sm:$0xff] %v1225_v43 }
 0x116   :  { %v1110_v53 = vpop.f32.mrb[0].mxu0 }
 0x117   :  { %v1426_v57 = vclamps-f32 %v1110_v53, 1.0  ;;  %v1117_v58 = vpop.f32.mrb[1].mxu0  ;;  %v1123_v60 = vpop.f32.mrb[0].mxu1 }
 0x118   :  { %v1425_v61 = vclamps-f32 %v1117_v58, 1.0  ;;  %v1126_v62 = vpop.f32.mrb[2].mxu0  ;;  %v1131_v0 = vpop.f32.mrb[1].mxu1  ;;  %v1418_v26 = vclamps-f32 %v1123_v60, 1.0 }
 0x119   :  { %v472_v2 = vmul.f32 %v1113_v55, %v1426_v57  ;;  %v1421_v3 = vclamps-f32 %v1126_v62, 1.0  ;;  %v1142_v4 = vpop.f32.mrb[3].mxu0  ;;  %v1424_v6 = vclamps-f32 %v1131_v0, 1.0  ;;  %v1148_v7 = vpop.f32.mrb[2].mxu1 }
 0x11a   :  { %1431 = vst [vmem:[#allocation6_spill] sm:$0xff] %v1148_v7  ;;  %v473_v8 = vmul.f32 %v1120_v59, %v1425_v61  ;;  %v1420_v9 = vclamps-f32 %v1142_v4, 1.0  ;;  %v1154_v10 = vpop.f32.mrb[3].mxu1  ;;  %v480_v39 = vmul.f32 %v1196_v31, %v1418_v26  ;;  %v1415_v40 = vclamps-f32 %v1148_v7, 1.0 }
 0x11b   :  { %v475_v12 = vmul.f32 %v1129_v63, %v1421_v3  ;;  %v474_v13 = vmul.f32 %v1136_v1, %v1424_v6  ;;  %v1419_v14 = vclamps-f32 %v1154_v10, 1.0 }
 0x11c   :  { %v476_v15 = vmul.f32 %v1145_v5, %v1420_v9  ;;  %v484_v17 = vadd.f32 %v473_v8, %v472_v2  ;;  %v483_v46 = vmul.f32 %v1225_v43, %v1415_v40  ;;  %v942_v2 = vmov 1.0  }
 0x11d   :  { %v477_v18 = vmul.f32 %v1159_v11, %v1419_v14 }
 0x11e   :  { %v1176_v19 = vpop.f32.mrb[4].mxu0  ;;  %v485_v21 = vadd.f32 %v484_v17, %v474_v13  ;;  %v488_v22 = vadd.f32 %v476_v15, %v475_v12 }
 0x11f   :  { %v1423_v23 = vclamps-f32 %v1176_v19, 1.0  ;;  %v1183_v24 = vpop.f32.mrb[5].mxu0 }
 0x120   :  { %v1422_v27 = vclamps-f32 %v1183_v24, 1.0  ;;  %486 = vadd.xlane.f32.xlu0 %v485_v21  ;;  %v1190_v28 = vpop.f32.mrb[6].mxu0  ;;  %v489_v30 = vadd.f32 %v488_v22, %v477_v18 }
 0x121   :  { %v478_v32 = vmul.f32 %v1179_v20, %v1423_v23  ;;  %v1417_v33 = vclamps-f32 %v1190_v28, 1.0  ;;  %v1202_v34 = vpop.f32.mrb[7].mxu0 }
 0x122   :  { %v479_v35 = vmul.f32 %v1186_v25, %v1422_v27  ;;  %v1416_v36 = vclamps-f32 %v1202_v34, 1.0  ;;  %490 = vadd.xlane.f32.xlu1 %v489_v30 }
 0x123   :  { %v481_v37 = vmul.f32 %v1193_v29, %v1417_v33 }
 0x124   :  { %v482_v41 = vmul.f32 %v1215_v38, %v1416_v36  ;;  %v492_v42 = vadd.f32 %v479_v35, %v478_v32 }
 0x126   :  { %v493_v44 = vadd.f32 %v492_v42, %v480_v39  ;;  %v496_v45 = vadd.f32 %v482_v41, %v481_v37 }
 0x128   :  { %494 = vadd.xlane.f32.xlu0 %v493_v44  ;;  %v497_v47 = vadd.f32 %v496_v45, %v483_v46 }
 0x12c   :  { %498 = vadd.xlane.f32.xlu0 %v497_v47 }
 0x133   :  { %644 = vperm.xlu1 %889, %v1233_v48  }
 0x137   :  { %654 = vperm.xlu1 %889, %v1239_v49  }
 0x13b   :  { %659 = vperm.xlu1 %889, %v1245_v50  }
 0x142   :  { %649 = vperm.xlu0 %888, %v1251_v51  }
 0x1ad   :  { %v1254_v52 = vpop.xlane.xlu0 %486 }
 0x1ae   :  { %vm520_vm13 = vcmp.le.f32.partialorder %v1254_v52, 0.70710677  ;;  %v500_v56 = vmul.f32 %v1254_v52, %v1254_v52  ;;  %vm540_vm14 = vcmp.le.f32.partialorder %v1254_v52, 1.7948966e-09  ;;  %vm564_vm0 = vcmp.le.f32.partialorder %v1254_v52, -0.70710677 }
 0x1af   :  { %v536_v8 = vsel %vm520_vm13, -1.0, %v942_v2  ;;  %v1260_v12 = vpop.xlane.xlu1 %490  ;;  %v800_v15 = vsel %vm520_vm13, 1.0, %v941_v54  ;;  %v804_v16 = vsel %vm540_vm14, 1.0, %v941_v54  ;;  %vm588_vm2 = vcmp.le.f32.partialorder %v1254_v52, -1.0 }
 0x1b0   :  { %v556_v13 = vsub.f32 0.0, %v536_v8  ;;  %vm521_vm15 = vcmp.le.f32.partialorder %v1260_v12, 0.70710677  ;;  %v501_v17 = vmul.f32 %v1260_v12, %v1260_v12  ;;  %v1268_v18 = vmul.f32 8.0, %v500_v56 }
 0x1b1   :  { %v537_v22 = vsel %vm521_vm15, -1.0, %v942_v2  ;;  %vm541_vm1 = vcmp.le.f32.partialorder %v1260_v12, 1.7948966e-09  ;;  %v552_v32 = vadd.f32 %v804_v16, %v800_v15  ;;  %v808_v35 = vsel %vm564_vm0, 1.0, %v941_v54 }
 0x1b2   :  { %v560_v21 = vsel %vm540_vm14, %v556_v13, %v536_v8  ;;  %v557_v30 = vsub.f32 0.0, %v537_v22  ;;  %v801_v37 = vsel %vm521_vm15, 1.0, %v941_v54  ;;  %v1278_v42 = vmul.f32 8.0, %v501_v17 }
 0x1b3   :  { %v580_v41 = vsub.f32 0.0, %v560_v21  ;;  %v805_v44 = vsel %vm541_vm1, 1.0, %v941_v54  ;;  %v508_v46 = vmul.f32 %v1268_v18, %v500_v56  ;;  %v812_v47 = vsel %vm588_vm2, 1.0, %v941_v54 }
 0x1b4   :  { %v561_v45 = vsel %vm541_vm1, %v557_v30, %v537_v22  ;;  %vm565_vm3 = vcmp.le.f32.partialorder %v1260_v12, -0.70710677  ;;  %vm589_vm4 = vcmp.le.f32.partialorder %v1260_v12, -1.0  ;;  %v576_v15 = vadd.f32 %v808_v35, %v552_v32 }
 0x1b5   :  { %v1276_v39 = vpop.xlane.xlu0 %494  ;;  %v581_v8 = vsub.f32 0.0, %v561_v45  ;;  %v553_v16 = vadd.f32 %v805_v44, %v801_v37  ;;  %v584_v40 = vsel %vm564_vm0, %v580_v41, %v560_v21  ;;  %v509_v36 = vmul.f32 %v1278_v42, %v501_v17 }
 0x1b6   :  { %v502_v13 = vmul.f32 %v1276_v39, %v1276_v39  ;;  %vm522_vm5 = vcmp.le.f32.partialorder %v1276_v39, 0.70710677  ;;  %vm542_vm6 = vcmp.le.f32.partialorder %v1276_v39, 1.7948966e-09  ;;  %v809_v32 = vsel %vm565_vm3, 1.0, %v941_v54 }
 0x1b7   :  { %v802_v56 = vsel %vm522_vm5, 1.0, %v941_v54  ;;  %v538_v22 = vsel %vm522_vm5, -1.0, %v942_v2  ;;  %v806_v33 = vsel %vm542_vm6, 1.0, %v941_v54  ;;  %v585_v35 = vsel %vm565_vm3, %v581_v8, %v561_v45 }
 0x1b8   :  { %v558_v26 = vsub.f32 0.0, %v538_v22  ;;  %v813_v37 = vsel %vm589_vm4, 1.0, %v941_v54  ;;  %vm566_vm7 = vcmp.le.f32.partialorder %v1276_v39, -0.70710677  ;;  %v506_v21 = vmul.f32 8.0, %v502_v13 }
 0x1b9   :  { %v1292_v30 = vpop.xlane.xlu0 %498  ;;  %v554_v17 = vadd.f32 %v806_v33, %v802_v56  ;;  %vm590_vm8 = vcmp.le.f32.partialorder %v1276_v39, -1.0  ;;  %v604_v3 = vsub.f32 0.0, %v584_v40  ;;  %v577_v27 = vadd.f32 %v809_v32, %v553_v16 }
 0x1ba   :  { %v562_v41 = vsel %vm542_vm6, %v558_v26, %v538_v22  ;;  %v503_v44 = vmul.f32 %v1292_v30, %v1292_v30  ;;  %vm523_vm9 = vcmp.le.f32.partialorder %v1292_v30, 0.70710677  ;;  %vm543_vm10 = vcmp.le.f32.partialorder %v1292_v30, 1.7948966e-09 }
 0x1bb   :  { %v582_v14 = vsub.f32 0.0, %v562_v41  ;;  %v803_v8 = vsel %vm523_vm9, 1.0, %v941_v54  ;;  %v539_v9 = vsel %vm523_vm9, -1.0, %v942_v2  ;;  %v807_v33 = vsel %vm543_vm10, 1.0, %v941_v54 }
 0x1bc   :  { %v507_v45 = vmul.f32 8.0, %v503_v44  ;;  %v555_v56 = vadd.f32 %v807_v33, %v803_v8  ;;  %v559_v22 = vsub.f32 0.0, %v539_v9  ;;  %vm567_vm11 = vcmp.le.f32.partialorder %v1292_v30, -0.70710677 }
 0x1bd   :  { %v586_v26 = vsel %vm566_vm7, %v582_v14, %v562_v41  ;;  %v605_v23 = vsub.f32 0.0, %v585_v35  ;;  %v810_v6 = vsel %vm566_vm7, 1.0, %v941_v54  ;;  %v510_v61 = vmul.f32 %v506_v21, %v502_v13 }
 0x1be   :  { %v578_v2 = vadd.f32 %v810_v6, %v554_v17  ;;  %v814_v57 = vsel %vm590_vm8, 1.0, %v941_v54  ;;  %v563_v14 = vsel %vm543_vm10, %v559_v22, %v539_v9  ;;  %v606_v41 = vsub.f32 0.0, %v586_v26 }
 0x1bf   :  { %v811_v8 = vsel %vm567_vm11, 1.0, %v941_v54  ;;  %v583_v16 = vsub.f32 0.0, %v563_v14  ;;  %vm591_vm12 = vcmp.le.f32.partialorder %v1292_v30, -1.0  ;;  %v511_v32 = vmul.f32 %v507_v45, %v503_v44 }
 0x1c0   :  { %v579_v33 = vadd.f32 %v811_v8, %v555_v56  ;;  %v512_v13 = vsub.f32 %v508_v46, %v1268_v18  ;;  %v600_v6 = vadd.f32 %v812_v47, %v576_v15  ;;  %v608_v43 = vsel %vm588_vm2, %v604_v3, %v584_v40 }
 0x1c1   :  { %v587_v17 = vsel %vm567_vm11, %v583_v16, %v563_v14  ;;  %v513_v9 = vsub.f32 %v509_v36, %v1278_v42  ;;  %v601_v22 = vadd.f32 %v813_v37, %v577_v27  ;;  %v815_v38 = vsel %vm591_vm12, 1.0, %v941_v54 }
 0x1c2   :  { %v607_v29 = vsub.f32 0.0, %v587_v17  ;;  %v516_v7 = vadd.f32 1.0, %v512_v13  ;;  %v609_v44 = vsel %vm589_vm4, %v605_v23, %v585_v35  ;;  %v616_v18 = vmul.f32 2.0, %v600_v6 }
 0x1c3   :  { %v517_v46 = vadd.f32 1.0, %v513_v9  ;;  %v514_v47 = vsub.f32 %v510_v61, %v506_v21  ;;  %v602_v15 = vadd.f32 %v814_v57, %v578_v2  ;;  %v610_v3 = vsel %vm590_vm8, %v606_v41, %v586_v26 }
 0x1c4   :  { %v612_v56 = vmul.f32 %v608_v43, %v516_v7  ;;  %v515_v40 = vsub.f32 %v511_v32, %v507_v45  ;;  %v603_v36 = vadd.f32 %v815_v38, %v579_v33  ;;  %v617_v42 = vmul.f32 2.0, %v601_v22  ;;  %v650_v22 = vpop.permute.xlu0 %649 }
 0x1c5   :  { %v613_v27 = vmul.f32 %v609_v44, %v517_v46  ;;  %v518_v37 = vadd.f32 1.0, %v514_v47  ;;  %v611_v54 = vsel %vm591_vm12, %v607_v29, %v587_v17  ;;  %v633_v23 = vstv %s1409_s0  ;;  %v645_v17 = vpop.permute.xlu1 %644  ;;  %s943_s0 = smov [#allocation3]  }
 0x1c6   :  { %v620_v14 = vsub.f32 %v612_v56, %v616_v18  ;;  %v519_v8 = vadd.f32 1.0, %v515_v40  ;;  %v618_v7 = vmul.f32 2.0, %v602_v15  ;;  %v619_v21 = vmul.f32 2.0, %v603_v36  ;;  %s735_s9 = sshll.u32 %s943_s0, 4  ;;  %s736_s9 = int_to_ptr.vmem [resolvable:$true] %s735_s9 }
 0x1c7   :  { %v621_v61 = vsub.f32 %v613_v27, %v617_v42  ;;  %v614_v57 = vmul.f32 %v610_v3, %v518_v37  ;;  %v1437_v18 = vclamps-f32 %v1131_v0, 1.0  ;;  %v1438_v47 = vclamps-f32 %v1176_v19, 1.0  ;;  %s916_s1 = scalar_lea.vmem %s736_s9, 1536  ;;  %p921_p1 = scmp.lt.s32.totalorder %s736_s9, %s736_s9 }
 0x1c8   :  { %v629_v43 = vsub.f32 %v620_v14, %v1254_v52  ;;  %v615_v35 = vmul.f32 %v611_v54, %v519_v8  ;;  %v1440_v56 = vclamps-f32 %v1126_v62, 1.0  ;;  %v1441_v36 = vclamps-f32 %v1142_v4, 1.0  ;;  %p917_p0 = scmp.ne.s32.totalorder %s736_s9, %s916_s1  ;;  %p922_p2 = scmp.lt.s32.totalorder %s916_s1, %s916_s1 }
 0x1c9   :  { %v630_v38 = vsub.f32 %v621_v61, %v1260_v12  ;;  %v622_v45 = vsub.f32 %v614_v57, %v618_v7  ;;  %v655_v9 = vpop.permute.xlu1 %654  ;;  %v664_v46 = vmul.f32 %v1437_v18, %v645_v17  ;;  %v1442_v19 = vclamps-f32 %v1154_v10, 1.0 }
 0x1ca   :  { %v634_v26 = vmul.f32 %v633_v23, %v629_v43  ;;  %v623_v2 = vsub.f32 %v615_v35, %v619_v21  ;;  %v665_v3 = vmul.f32 %v1440_v56, %v650_v22  ;;  %v1443_v14 = vclamps-f32 %v1123_v60, 1.0  ;;  %p923_p3 = por %p922_p2, %p921_p1 }
 0x1cb   :  { %v635_v41 = vmul.f32 %v633_v23, %v630_v38  ;;  %v631_v29 = vsub.f32 %v622_v45, %v1276_v39  ;;  %v667_v37 = vmul.f32 %v1442_v19, %v650_v22  ;;  %v1445_v43 = vclamps-f32 %v1202_v34, 1.0  ;;  %v1448_v34 = vld [vmem:[#allocation7_spill] sm:$0xff] }
 0x1cc   :  { %v638_v16 = vmul.f32 %v634_v26, %v1233_v48  ;;  %v632_v32 = vsub.f32 %v623_v2, %v1292_v30  ;;  %v1435_v48 = vclamps-f32 %v1110_v53, 1.0  ;;  %v1436_v30 = vclamps-f32 %v1117_v58, 1.0  ;;  %v1449_v26 = vld [vmem:[#allocation8_spill] sm:$0xff]  ;;  %p924_p4 = pnand %p923_p3, %p917_p0 }
 0x1cd   :  { %v639_v33 = vmul.f32 %v635_v41, %v1251_v51  ;;  %v636_v13 = vmul.f32 %v633_v23, %v631_v29  ;;  %v660_v39 = vpop.permute.xlu1 %659  ;;  %v666_v53 = vmul.f32 %v1441_v36, %v650_v22  ;;  %v670_v4 = vmul.f32 %v1443_v14, %v655_v9  ;;  %v1450_v41 = vld [vmem:[#allocation9_spill] sm:$0xff] }
 0x1ce   :  { %676 = vperm.xlu0 %888, %v638_v16   ;;  %v637_v6 = vmul.f32 %v633_v23, %v632_v32  ;;  %v662_v44 = vmul.f32 %v1435_v48, %v645_v17  ;;  %v663_v51 = vmul.f32 %v1436_v30, %v645_v17 }
 0x1cf   :  { %681 = vperm.xlu1 %889, %v639_v33   ;;  %v640_v52 = vmul.f32 %v636_v13, %v1239_v49  ;;  %v668_v49 = vmul.f32 %v1438_v47, %v655_v9 }
 0x1d0   :  { %v641_v12 = vmul.f32 %v637_v6, %v1245_v50  ;;  %v1439_v50 = vclamps-f32 %v1183_v24, 1.0 }
 0x1d2   :  { %686 = vperm.xlu0 %888, %v640_v52   ;;  %v669_v15 = vmul.f32 %v1439_v50, %v655_v9 }
 0x1d3   :  { %691 = vperm.xlu1 %889, %v641_v12  }
 0x24d   :  { %v677_v40 = vpop.permute.xlu0 %676 }
 0x24e   :  { %v694_v27 = vmul.f32 %v1113_v55, %v677_v40  ;;  %v695_v58 = vmul.f32 %v1120_v59, %v677_v40  ;;  %v696_v0 = vmul.f32 %v1136_v1, %v677_v40  ;;  %v682_v42 = vpop.permute.xlu1 %681  ;;  %v1444_v59 = vclamps-f32 %v1190_v28, 1.0  ;;  %v1446_v28 = vld [vmem:[#allocation6_spill] sm:$0xff] }
 0x24f   :  { %v697_v24 = vmul.f32 %v1129_v63, %v682_v42  ;;  %v698_v54 = vmul.f32 %v1145_v5, %v682_v42  ;;  %v699_v62 = vmul.f32 %v1159_v11, %v682_v42  ;;  %v672_v63 = vmul.f32 %v1445_v43, %v660_v39 }
 0x250   :  { %v706_v8 = vadd.f32 %v694_v27, %v662_v44  ;;  %v707_v23 = vadd.f32 %v695_v58, %v663_v51  ;;  %v708_v55 = vadd.f32 %v696_v0, %v664_v46  ;;  %v671_v61 = vmul.f32 %v1444_v59, %v660_v39 }
 0x251   :  { %v709_v1 = vadd.f32 %v697_v24, %v665_v3  ;;  %v710_v57 = vadd.f32 %v698_v54, %v666_v53  ;;  %v711_v7 = vadd.f32 %v699_v62, %v667_v37  ;;  %v687_v10 = vpop.permute.xlu0 %686  ;;  %v1447_v21 = vclamps-f32 %v1446_v28, 1.0 }
 0x252   :  { %718 = vst [vmem:[#allocation3] sm:$0xff] %v706_v8  ;;  %719 = vst [vmem:[#allocation3 + $0x8] sm:$0xff] %v707_v23  ;;  %v700_v5 = vmul.f32 %v1179_v20, %v687_v10  ;;  %v701_v60 = vmul.f32 %v1186_v25, %v687_v10  ;;  %v702_v11 = vmul.f32 %v1196_v31, %v687_v10  ;;  %v692_v35 = vpop.permute.xlu1 %691 }
 0x253   :  { %720 = vst [vmem:[#allocation3 + $0x10] sm:$0xff] %v708_v55  ;;  %v673_v38 = vmul.f32 %v1447_v21, %v660_v39  ;;  %721 = vst [vmem:[#allocation3 + $0x18] sm:$0xff] %v709_v1  ;;  %v703_v45 = vmul.f32 %v1448_v34, %v692_v35  ;;  %v704_v2 = vmul.f32 %v1449_v26, %v692_v35 }
 0x254   :  { %722 = vst [vmem:[#allocation3 + $0x20] sm:$0xff] %v710_v57  ;;  %723 = vst [vmem:[#allocation3 + $0x28] sm:$0xff] %v711_v7  ;;  %v705_v29 = vmul.f32 %v1450_v41, %v692_v35  ;;  %v712_v20 = vadd.f32 %v700_v5, %v668_v49  ;;  %v713_v16 = vadd.f32 %v701_v60, %v669_v15 }
 0x255   :  { %v714_v25 = vadd.f32 %v702_v11, %v670_v4  ;;  %v715_v32 = vadd.f32 %v703_v45, %v671_v61  ;;  %v716_v31 = vadd.f32 %v704_v2, %v672_v63 }
 0x256   :  { %v717_v33 = vadd.f32 %v705_v29, %v673_v38  ;;  %724 = vst [vmem:[#allocation3 + $0x30] sm:$0xff] %v712_v20  ;;  %725 = vst [vmem:[#allocation3 + $0x38] sm:$0xff] %v713_v16 }
 0x257   :  { %726 = vst [vmem:[#allocation3 + $0x40] sm:$0xff] %v714_v25  ;;  %727 = vst [vmem:[#allocation3 + $0x48] sm:$0xff] %v715_v32 }
 0x258   :  { %728 = vst [vmem:[#allocation3 + $0x50] sm:$0xff] %v716_v31  ;;  %729 = vst [vmem:[#allocation3 + $0x58] sm:$0xff] %v717_v33 }
 0x259   :  { %927 = shalt.err (!%p924_p4)
}
 0x25a   :  { %s928_s12 = scalar_lea.hbm %s1414_s5, 1536 }
 0x25b   :  { %p929_p5 = scmp.ne.s32.totalorder %s1414_s5, %s928_s12  ;;  %p932_p6 = scmp.lt.u32.totalorder %s928_s12, %s1414_s5 }
 0x25d   :  { %p934_p7 = pnand %p932_p6, %p929_p5 }
 0x25f   :  { %937 = shalt.err (!%p934_p7)
}
 0x260   :  { %s944_s17 = smov 384   ;;  %s945_s18 = smov 24  }
 0x261   :  { %741 = dma.vmem_to_hbm [thread:$0]  %s736_s9, 1536, %s1414_s5, [#allocation4], %s944_s17, %s944_s17, %s945_s18  }
 0x262   :  { %938 = dma.done.wait [#allocation4], 1536  }
 0x263   :  { %939 = vsyncadd [#allocation4], 4294965760 }
 0x264   :  { %745 = vsyncpa [#allocation4], 1 }

</bundles_post_ra>
